<compile_context>
chip_gen: v5e
topology: v5e:2x2
jax: 0.10.0
libtpu: 0.0.40
codegen_flags: <defaults>
</compile_context>

<pallas_src>
import jax
import jax.numpy as jnp
from jax.experimental import pallas as pl
from jax.experimental.pallas import tpu as pltpu


def lstm_kernel(maxlen_ref,                                      # SMEM scalar prefetch: (1,) int32
                xproj_ref, len_ref, whh_ref, wfc_ref, bfc_ref,   # VMEM inputs
                out_ref):                                        # VMEM output (B, 1)
    """Whole packed-LSTM recurrence + FC head in a single grid step."""
    H = whh_ref.shape[0]
    B = len_ref.shape[0]

    max_t = maxlen_ref[0]                         # scalar loop bound = max(text_lengths)
    # Hoisted once: (B,1) -> (B,H) length mask broadcast (not re-emitted per step).
    len_b = jnp.broadcast_to(len_ref[...], (B, H))

    h0 = jnp.zeros((B, H), jnp.float32)
    c0 = jnp.zeros((B, H), jnp.float32)

    def step(t, carry):
        h, c = carry
        # gates = X_proj[t] + h @ W_hh   (bf16 MXU operands, f32 accumulate).
        # W_hh is re-read from VMEM each step instead of being held in 32 vregs.
        gates = xproj_ref[t].astype(jnp.float32) + jnp.dot(
            h.astype(jnp.bfloat16), whh_ref[...],
            preferred_element_type=jnp.float32)
        i_g = jax.nn.sigmoid(gates[:, 0 * H:1 * H])
        f_g = jax.nn.sigmoid(gates[:, 1 * H:2 * H])
        g_g = jnp.tanh(gates[:, 2 * H:3 * H])
        o_g = jax.nn.sigmoid(gates[:, 3 * H:4 * H])
        c_new = f_g * c + i_g * g_g
        h_new = o_g * jnp.tanh(c_new)
        # pack_padded_sequence: freeze state once t >= length[b]
        mask = t < len_b                          # (B, H) bool, pre-broadcast
        return jnp.where(mask, h_new, h), jnp.where(mask, c_new, c)

    h, _ = jax.lax.fori_loop(0, max_t, step, (h0, c0))

    # dropout(hidden[-1]) is identity at inference.
    # FC head: VPU multiply + cross-lane (XLU) reduce instead of a 1-column MXU pass.
    out_ref[...] = jnp.sum(h * wfc_ref[...], axis=-1, keepdims=True) + bfc_ref[...]


@jax.jit
def sentiment_forward(text, text_lengths, params):
    """text: (B, T) int32 token ids; text_lengths: (B,) int32."""
    emb = jnp.take(params["embedding"], text, axis=0).astype(jnp.float32)   # (B, T, E)
    B, T, E = emb.shape
    H = params["w_hh_t"].shape[0]

    # Hoisted input projection.  Transpose the narrow (E=32) embedding to (T,B,E) first
    # so X_proj is produced directly in (T,B,4H) layout (no 4H-wide transpose).
    bias = (params["b_ih"] + params["b_hh"]).astype(jnp.float32)            # (4H,)
    emb_t = emb.transpose(1, 0, 2).reshape(T * B, E)                        # (T*B, E)
    xproj = emb_t @ params["w_ih_t"].astype(jnp.float32) + bias             # (T*B, 4H)
    xproj = xproj.reshape(T, B, 4 * H).astype(jnp.bfloat16)                 # (T, B, 4H) bf16

    lengths = text_lengths.astype(jnp.int32)
    max_len = jnp.max(lengths).reshape(1)                                   # loop bound
    len_vec = lengths.reshape(B, 1)

    whh_bf = params["w_hh_t"].astype(jnp.bfloat16)                          # (H, 4H)
    wfc_row = params["w_fc_t"].reshape(1, H).astype(jnp.float32)            # (1, H)
    bfc = params["b_fc"].reshape(1, 1).astype(jnp.float32)                  # (1, 1)

    out = pl.pallas_call(
        lstm_kernel,
        out_shape=jax.ShapeDtypeStruct((B, 1), jnp.float32),
        grid_spec=pltpu.PrefetchScalarGridSpec(
            num_scalar_prefetch=1,           # max_len -> SMEM
            grid=(1,),                       # single program; recurrence is in-kernel
            in_specs=[
                pl.BlockSpec((T, B, 4 * H), lambda i, ml: (0, 0, 0)),  # X_proj (bf16, resident)
                pl.BlockSpec((B, 1),        lambda i, ml: (0, 0)),     # lengths (mask source)
                pl.BlockSpec((H, 4 * H),    lambda i, ml: (0, 0)),     # W_hh^T (bf16)
                pl.BlockSpec((1, H),        lambda i, ml: (0, 0)),     # fc weight row
                pl.BlockSpec((1, 1),        lambda i, ml: (0, 0)),     # fc bias
            ],
            out_specs=pl.BlockSpec((B, 1), lambda i, ml: (0, 0)),
        ),
        compiler_params=pltpu.CompilerParams(dimension_semantics=("arbitrary",)),
    )(max_len, xproj, len_vec, whh_bf, wfc_row, bfc)
    return out


def ref_forward(text, text_lengths, params):
    """Pure-JAX f32 reference with identical semantics (for validation)."""
    emb = jnp.take(params["embedding"], text, axis=0).astype(jnp.float32)   # (B, T, E)
    B, T, _ = emb.shape
    H = params["w_hh_t"].shape[0]
    bias = params["b_ih"] + params["b_hh"]

    def step(carry, t):
        h, c = carry
        x_t = emb[:, t, :]
        gates = x_t @ params["w_ih_t"] + h @ params["w_hh_t"] + bias
        i = jax.nn.sigmoid(gates[:, :H])
        f = jax.nn.sigmoid(gates[:, H:2 * H])
        g = jnp.tanh(gates[:, 2 * H:3 * H])
        o = jax.nn.sigmoid(gates[:, 3 * H:])
        c_new = f * c + i * g
        h_new = o * jnp.tanh(c_new)
        mask = (t < text_lengths)[:, None]
        return (jnp.where(mask, h_new, h), jnp.where(mask, c_new, c)), None

    init = (jnp.zeros((B, H), jnp.float32), jnp.zeros((B, H), jnp.float32))
    (h, _), _ = jax.lax.scan(step, init, jnp.arange(T))
    return h @ params["w_fc_t"] + params["b_fc"].reshape(1, 1)


def make_params(key, vocab, E, H):
    ks = jax.random.split(key, 7)
    s = 0.1
    return {
        "embedding": jax.random.normal(ks[0], (vocab, E), jnp.float32) * s,
        "w_ih_t":    jax.random.normal(ks[1], (E, 4 * H), jnp.float32) * s,
        "w_hh_t":    jax.random.normal(ks[2], (H, 4 * H), jnp.float32) * s,
        "b_ih":      jax.random.normal(ks[3], (4 * H,), jnp.float32) * s,
        "b_hh":      jax.random.normal(ks[4], (4 * H,), jnp.float32) * s,
        "w_fc_t":    jax.random.normal(ks[5], (H, 1), jnp.float32) * s,
        "b_fc":      jax.random.normal(ks[6], (1,), jnp.float32) * s,
    }


if __name__ == "__main__":
    # Small shapes consistent with the module: vocab=50, embed=32, hidden=128,
    # batch=8 (full sublane height), T=12.
    VOCAB, E, H, B, T = 50, 32, 128, 8, 12
    key = jax.random.PRNGKey(0)
    kp, kt, kl = jax.random.split(key, 3)

    params = make_params(kp, VOCAB, E, H)
    text = jax.random.randint(kt, (B, T), 0, VOCAB, dtype=jnp.int32)
    text_lengths = jax.random.randint(kl, (B,), 3, T + 1, dtype=jnp.int32)

    out = jax.block_until_ready(sentiment_forward(text, text_lengths, params))
    ref = jax.block_until_ready(ref_forward(text, text_lengths, params))

    assert out.shape == (B, 1)
    # Loose tolerance: X_proj and the recurrence matmul intentionally use bf16 operands
    # (f32 accumulation); the reference is pure f32.
    assert jnp.allclose(out, ref, atol=3e-2, rtol=3e-2), (out, ref)
    print("KERNEL_OK")
</pallas_src>

<mosaic_0001>
module attributes {stable_mosaic.version = 11 : i64} {
  func.func @lstm_kernel(%arg0: i32, %arg1: memref<1xi32, #tpu.memory_space<smem>>, %arg2: memref<12x8x512xbf16, #tpu.memory_space<vmem>>, %arg3: memref<8x1xi32, #tpu.memory_space<vmem>>, %arg4: memref<128x512xbf16, #tpu.memory_space<vmem>>, %arg5: memref<1x128xf32, #tpu.memory_space<vmem>>, %arg6: memref<1x1xf32, #tpu.memory_space<vmem>>, %arg7: memref<8x1xf32, #tpu.memory_space<vmem>>) attributes {dimension_semantics = [#tpu.dimension_semantics<arbitrary>], iteration_bounds = array<i64: 1>, scalar_prefetch = 1 : i64, scratch_operands = 0 : i64, tpu.core_type = #tpu.core_type<tc>, window_params = [{pipeline_mode = #tpu.pipeline_mode<synchronous>, transform_indices = @transform_0, window_bounds = array<i64: 12, 8, 512>}, {pipeline_mode = #tpu.pipeline_mode<synchronous>, transform_indices = @transform_1, window_bounds = array<i64: 8, 1>}, {pipeline_mode = #tpu.pipeline_mode<synchronous>, transform_indices = @transform_2, window_bounds = array<i64: 128, 512>}, {pipeline_mode = #tpu.pipeline_mode<synchronous>, transform_indices = @transform_3, window_bounds = array<i64: 1, 128>}, {pipeline_mode = #tpu.pipeline_mode<synchronous>, transform_indices = @transform_4, window_bounds = array<i64: 1, 1>}, {pipeline_mode = #tpu.pipeline_mode<synchronous>, transform_indices = @transform_5, window_bounds = array<i64: 8, 1>}]} {
    %c0 = arith.constant 0 : index
    %0 = memref.load %arg1[%c0] : memref<1xi32, #tpu.memory_space<smem>>
    %c0_0 = arith.constant 0 : index
    %c0_1 = arith.constant 0 : index
    %1 = vector.load %arg3[%c0_0, %c0_1] : memref<8x1xi32, #tpu.memory_space<vmem>>, vector<8x1xi32>
    %2 = vector.shape_cast %1 : vector<8x1xi32> to vector<8x1xi32>
    %3 = vector.broadcast %2 : vector<8x1xi32> to vector<8x128xi32>
    %cst = arith.constant 0.000000e+00 : f32
    %4 = vector.broadcast %cst : f32 to vector<8x128xf32>
    %cst_2 = arith.constant 0.000000e+00 : f32
    %5 = vector.broadcast %cst_2 : f32 to vector<8x128xf32>
    %c0_i32 = arith.constant 0 : i32
    %6 = arith.subi %0, %c0_i32 : i32
    %7 = arith.addi %c0_i32, %6 : i32
    %c1_i32 = arith.constant 1 : i32
    %8:2 = scf.for %arg8 = %c0_i32 to %7 step %c1_i32 iter_args(%arg9 = %4, %arg10 = %5) -> (vector<8x128xf32>, vector<8x128xf32>)  : i32 {
      %18 = arith.index_cast %arg8 : i32 to index
      %c0_10 = arith.constant 0 : index
      %c0_11 = arith.constant 0 : index
      %19 = vector.load %arg2[%18, %c0_10, %c0_11] : memref<12x8x512xbf16, #tpu.memory_space<vmem>>, vector<1x8x512xbf16>
      %20 = vector.shape_cast %19 : vector<1x8x512xbf16> to vector<8x512xbf16>
      %21 = arith.extf %20 : vector<8x512xbf16> to vector<8x512xf32>
      %22 = arith.truncf %arg9 : vector<8x128xf32> to vector<8x128xbf16>
      %c0_12 = arith.constant 0 : index
      %c0_13 = arith.constant 0 : index
      %23 = vector.load %arg4[%c0_12, %c0_13] : memref<128x512xbf16, #tpu.memory_space<vmem>>, vector<128x512xbf16>
      %cst_14 = arith.constant dense<0.000000e+00> : vector<8x512xf32>
      %24 = tpu.matmul %22, %23, %cst_14 {dimension_numbers = #tpu.dot_dimension_numbers<[1], [0], [0], [1], [0, 0, 1, 1], [], []>} : vector<8x128xbf16>, vector<128x512xbf16>, vector<8x512xf32> -> vector<8x512xf32>
      %25 = arith.addf %21, %24 : vector<8x512xf32>
      %26 = vector.extract_strided_slice %25 {offsets = [0, 0], sizes = [8, 128], strides = [1, 1]} : vector<8x512xf32> to vector<8x128xf32>
      %27 = arith.negf %26 : vector<8x128xf32>
      %28 = math.exp %27 : vector<8x128xf32>
      %cst_15 = arith.constant 1.000000e+00 : f32
      %29 = vector.broadcast %cst_15 : f32 to vector<8x128xf32>
      %30 = arith.addf %29, %28 : vector<8x128xf32>
      %31 = arith.divf %29, %30 : vector<8x128xf32>
      %32 = vector.extract_strided_slice %25 {offsets = [0, 128], sizes = [8, 128], strides = [1, 1]} : vector<8x512xf32> to vector<8x128xf32>
      %33 = arith.negf %32 : vector<8x128xf32>
      %34 = math.exp %33 : vector<8x128xf32>
      %cst_16 = arith.constant 1.000000e+00 : f32
      %35 = vector.broadcast %cst_16 : f32 to vector<8x128xf32>
      %36 = arith.addf %35, %34 : vector<8x128xf32>
      %37 = arith.divf %35, %36 : vector<8x128xf32>
      %38 = vector.extract_strided_slice %25 {offsets = [0, 256], sizes = [8, 128], strides = [1, 1]} : vector<8x512xf32> to vector<8x128xf32>
      %39 = math.tanh %38 : vector<8x128xf32>
      %40 = vector.extract_strided_slice %25 {offsets = [0, 384], sizes = [8, 128], strides = [1, 1]} : vector<8x512xf32> to vector<8x128xf32>
      %41 = arith.negf %40 : vector<8x128xf32>
      %42 = math.exp %41 : vector<8x128xf32>
      %cst_17 = arith.constant 1.000000e+00 : f32
      %43 = vector.broadcast %cst_17 : f32 to vector<8x128xf32>
      %44 = arith.addf %43, %42 : vector<8x128xf32>
      %45 = arith.divf %43, %44 : vector<8x128xf32>
      %46 = arith.mulf %37, %arg10 : vector<8x128xf32>
      %47 = arith.mulf %31, %39 : vector<8x128xf32>
      %48 = arith.addf %46, %47 : vector<8x128xf32>
      %49 = math.tanh %48 : vector<8x128xf32>
      %50 = arith.mulf %45, %49 : vector<8x128xf32>
      %51 = vector.broadcast %arg8 : i32 to vector<8x128xi32>
      %52 = arith.cmpi slt, %51, %3 : vector<8x128xi32>
      %53 = arith.select %52, %50, %arg9 : vector<8x128xi1>, vector<8x128xf32>
      %54 = arith.select %52, %48, %arg10 : vector<8x128xi1>, vector<8x128xf32>
      scf.yield %53, %54 : vector<8x128xf32>, vector<8x128xf32>
    }
    %c0_3 = arith.constant 0 : index
    %c0_4 = arith.constant 0 : index
    %9 = vector.load %arg5[%c0_3, %c0_4] : memref<1x128xf32, #tpu.memory_space<vmem>>, vector<1x128xf32>
    %10 = vector.broadcast %9 : vector<1x128xf32> to vector<8x128xf32>
    %11 = arith.mulf %8#0, %10 : vector<8x128xf32>
    %cst_5 = arith.constant dense<0.000000e+00> : vector<8xf32>
    %12 = vector.multi_reduction <add>, %11, %cst_5 [1] : vector<8x128xf32> to vector<8xf32>
    %13 = vector.shape_cast %12 : vector<8xf32> to vector<8x1xf32>
    %c0_6 = arith.constant 0 : index
    %c0_7 = arith.constant 0 : index
    %14 = vector.load %arg6[%c0_6, %c0_7] : memref<1x1xf32, #tpu.memory_space<vmem>>, vector<1x1xf32>
    %15 = vector.broadcast %14 : vector<1x1xf32> to vector<8x1xf32>
    %16 = arith.addf %13, %15 : vector<8x1xf32>
    %c0_8 = arith.constant 0 : index
    %c0_9 = arith.constant 0 : index
    %17 = vector.load %arg7[%c0_8, %c0_9] : memref<8x1xf32, #tpu.memory_space<vmem>>, vector<8x1xf32>
    tpu.vector_store %arg7[%c0_8, %c0_9], %16 {strides = array<i32>} : memref<8x1xf32, #tpu.memory_space<vmem>>, vector<8x1xf32>,
    return
  }
  func.func @transform_0(%arg0: i32, %arg1: memref<1xi32, #tpu.memory_space<smem>>) -> (i32, i32, i32) {
    %c0_i32 = arith.constant 0 : i32
    %c0_i32_0 = arith.constant 0 : i32
    %c0_i32_1 = arith.constant 0 : i32
    %c0_i32_2 = arith.constant 0 : i32
    return %c0_i32, %c0_i32_0, %c0_i32_1 : i32, i32, i32
  }
  func.func @transform_1(%arg0: i32, %arg1: memref<1xi32, #tpu.memory_space<smem>>) -> (i32, i32) {
    %c0_i32 = arith.constant 0 : i32
    %c0_i32_0 = arith.constant 0 : i32
    %c0_i32_1 = arith.constant 0 : i32
    return %c0_i32, %c0_i32_0 : i32, i32
  }
  func.func @transform_2(%arg0: i32, %arg1: memref<1xi32, #tpu.memory_space<smem>>) -> (i32, i32) {
    %c0_i32 = arith.constant 0 : i32
    %c0_i32_0 = arith.constant 0 : i32
    %c0_i32_1 = arith.constant 0 : i32
    return %c0_i32, %c0_i32_0 : i32, i32
  }
  func.func @transform_3(%arg0: i32, %arg1: memref<1xi32, #tpu.memory_space<smem>>) -> (i32, i32) {
    %c0_i32 = arith.constant 0 : i32
    %c0_i32_0 = arith.constant 0 : i32
    %c0_i32_1 = arith.constant 0 : i32
    return %c0_i32, %c0_i32_0 : i32, i32
  }
  func.func @transform_4(%arg0: i32, %arg1: memref<1xi32, #tpu.memory_space<smem>>) -> (i32, i32) {
    %c0_i32 = arith.constant 0 : i32
    %c0_i32_0 = arith.constant 0 : i32
    %c0_i32_1 = arith.constant 0 : i32
    return %c0_i32, %c0_i32_0 : i32, i32
  }
  func.func @transform_5(%arg0: i32, %arg1: memref<1xi32, #tpu.memory_space<smem>>) -> (i32, i32) {
    %c0_i32 = arith.constant 0 : i32
    %c0_i32_0 = arith.constant 0 : i32
    %c0_i32_1 = arith.constant 0 : i32
    return %c0_i32, %c0_i32_0 : i32, i32
  }
}

</mosaic_0001>

<bundles_post_ra>
// kernel: sentiment_forward.1
= control target key start
LH: loop header
LB: loop body
LE: loop exit
PB: predicated region body
PF: predicated region fallthrough
CT: control target
= control target key end

     0   :  { %v644_v0 = vmov 0   ;;  %v691_v4 = vmov 0.0   ;;  %s938_s2 = inlined_call_operand.vmem [shape: s32[8,1], index: 2, kind: input, shape index: {}]   ;;  %s939_s0 = inlined_call_operand.<no memory space> [shape: s32[1], index: 0, kind: input, shape index: {}]   ;;  %s940_s1 = inlined_call_operand.vmem [shape: bf16[12,8,512], index: 1, kind: input, shape index: {}]   ;;  %s941_s3 = inlined_call_operand.vmem [shape: bf16[128,512], index: 3, kind: input, shape index: {}]   ;;  %s942_s4 = inlined_call_operand.vmem [shape: f32[1,128], index: 4, kind: input, shape index: {}]   ;;  %s943_s6 = inlined_call_operand.vmem [shape: f32[8,1], index: 6, kind: output, shape index: {}]   ;;  %s944_s5 = inlined_call_operand.<no memory space> [shape: f32[1,1], index: 5, kind: input, shape index: {}]  }
   0x1   :  { %593 = vset.pattern.permute.xlu0 %v644_v0  ;;  %v25_v1 = vld [vmem:[%s938_s2] sm:$0xff]  ;;  %v12_v2 = vstv %s944_s5  ;;  %p393_p0 = scmp.le.s32.totalorder %s939_s0, 0 }
   0x2   :  { %27 = vperm.xlu0 %593, %v25_v1   ;;  %13 = vst [vmem:[#allocation4] sm:$0x1] %v12_v2  ;;  %s697_s2 = smov (!%p393_p0), 0  }
  0x70   :  { %386 = sbr.rel (%p393_p0) target bundleno = 324 (0x144), region = 42 }
  0x74   :  { %v686_v3 = vpop.permute.xlu0 %27 }
  0x75   :  { %v693_v5 = vmov 0.0   ;;  %v695_v6 = vmov 0.0  }
  0x76 LB: > { %v510_v7 = vld [vmem:[%s941_s3 + $0xe0] sm:$0xf]  ;;  %v558_v8 = vld [vmem:[%s941_s3 + $0xec] sm:$0xf0]  ;;  %v556_v9 = vld [vmem:[%s941_s3 + $0xe4] sm:$0xf]  ;;  %s638_s2 = sphi %s697_s2, %s32_s2   ;;  %v634_v6 = vphi %v695_v6, %v947_v6   ;;  %v630_v5 = vphi %v693_v5, %v361_v5  }
  0x77   : > { %v511_v10 = vor.u32 %v558_v8, %v510_v7  ;;  %v512_v11 = vld [vmem:[%s941_s3 + $0xf0] sm:$0xf0]  ;;  %v557_v12 = vld [vmem:[%s941_s3 + $0xec] sm:$0xf]  ;;  %v520_v13 = vld [vmem:[%s941_s3 + $0xf8] sm:$0xf0] }
  0x78   : > { %v515_v14 = vor.u32 %v556_v9, %v512_v11  ;;  %v523_v15 = vor.u32 %v557_v12, %v520_v13  ;;  %v494_v16 = vld [vmem:[%s941_s3 + $0xc0] sm:$0xf]  ;;  %v554_v17 = vld [vmem:[%s941_s3 + $0xcc] sm:$0xf0]  ;;  %v552_v18 = vld [vmem:[%s941_s3 + $0xc4] sm:$0xf] }
  0x79   : > { %239 = vmatpush.bf16.msra.mxu0 %v511_v10  ;;  %v495_v19 = vor.u32 %v554_v17, %v494_v16  ;;  %v496_v20 = vld [vmem:[%s941_s3 + $0xd0] sm:$0xf0]  ;;  %v553_v21 = vld [vmem:[%s941_s3 + $0xcc] sm:$0xf]  ;;  %v504_v22 = vld [vmem:[%s941_s3 + $0xd8] sm:$0xf0] }
  0x7a   : > { %252 = vmatpush.bf16.msra.mxu1 %v515_v14  ;;  %278 = vmatpush.bf16.msra.mxu3 %v523_v15  ;;  %v499_v23 = vor.u32 %v552_v18, %v496_v20  ;;  %v507_v24 = vor.u32 %v553_v21, %v504_v22  ;;  %v518_v25 = vld [vmem:[%s941_s3 + $0xe8] sm:$0xf]  ;;  %v559_v26 = vld [vmem:[%s941_s3 + $0xf4] sm:$0xf0]  ;;  %v478_v27 = vld [vmem:[%s941_s3 + $0xa0] sm:$0xf] }
  0x7b   : > { %v519_v28 = vor.u32 %v559_v26, %v518_v25  ;;  %v550_v29 = vld [vmem:[%s941_s3 + $0xac] sm:$0xf0]  ;;  %v548_v30 = vld [vmem:[%s941_s3 + $0xa4] sm:$0xf]  ;;  %v480_v31 = vld [vmem:[%s941_s3 + $0xb0] sm:$0xf0] }
  0x7c   : > { %v549_v32 = vld [vmem:[%s941_s3 + $0xac] sm:$0xf]  ;;  %v488_v33 = vld [vmem:[%s941_s3 + $0xb8] sm:$0xf0]  ;;  %v502_v34 = vld [vmem:[%s941_s3 + $0xc8] sm:$0xf]  ;;  %v479_v35 = vor.u32 %v550_v29, %v478_v27  ;;  %v483_v39 = vor.u32 %v548_v30, %v480_v31 }
  0x7d   : > { %240 = vmatpush.bf16.msra.mxu0 %v495_v19  ;;  %265 = vmatpush.bf16.msra.mxu2 %v519_v28  ;;  %v555_v36 = vld [vmem:[%s941_s3 + $0xd4] sm:$0xf0]  ;;  %v462_v37 = vld [vmem:[%s941_s3 + $0x80] sm:$0xf]  ;;  %v546_v38 = vld [vmem:[%s941_s3 + $0x8c] sm:$0xf0]  ;;  %v491_v40 = vor.u32 %v549_v32, %v488_v33 }
  0x7e   : > { %253 = vmatpush.bf16.msra.mxu1 %v499_v23  ;;  %279 = vmatpush.bf16.msra.mxu3 %v507_v24  ;;  %v503_v41 = vor.u32 %v555_v36, %v502_v34  ;;  %v544_v42 = vld [vmem:[%s941_s3 + $0x84] sm:$0xf]  ;;  %v464_v43 = vld [vmem:[%s941_s3 + $0x90] sm:$0xf0]  ;;  %v545_v44 = vld [vmem:[%s941_s3 + $0x8c] sm:$0xf]  ;;  %v463_v48 = vor.u32 %v546_v38, %v462_v37 }
  0x7f   : > { %v472_v45 = vld [vmem:[%s941_s3 + $0x98] sm:$0xf0]  ;;  %v486_v46 = vld [vmem:[%s941_s3 + $0xa8] sm:$0xf]  ;;  %v551_v47 = vld [vmem:[%s941_s3 + $0xb4] sm:$0xf0]  ;;  %v467_v52 = vor.u32 %v544_v42, %v464_v43 }
  0x80   : > { %v487_v49 = vor.u32 %v551_v47, %v486_v46  ;;  %v446_v50 = vld [vmem:[%s941_s3 + $0x60] sm:$0xf]  ;;  %v542_v51 = vld [vmem:[%s941_s3 + $0x6c] sm:$0xf0]  ;;  %v475_v53 = vor.u32 %v545_v44, %v472_v45  ;;  %v540_v54 = vld [vmem:[%s941_s3 + $0x64] sm:$0xf] }
  0x81   : > { %241 = vmatpush.bf16.msra.mxu0 %v479_v35  ;;  %266 = vmatpush.bf16.msra.mxu2 %v503_v41  ;;  %v470_v55 = vld [vmem:[%s941_s3 + $0x88] sm:$0xf]  ;;  %v547_v56 = vld [vmem:[%s941_s3 + $0x94] sm:$0xf0]  ;;  %v448_v57 = vld [vmem:[%s941_s3 + $0x70] sm:$0xf0]  ;;  %v447_v60 = vor.u32 %v542_v51, %v446_v50  ;;  %v46_v41 = vpack.c.bf16 %v634_v6, %v634_v6 }
  0x82   : > { %254 = vmatpush.bf16.msra.mxu1 %v483_v39  ;;  %280 = vmatpush.bf16.msra.mxu3 %v491_v40  ;;  %v541_v58 = vld [vmem:[%s941_s3 + $0x6c] sm:$0xf]  ;;  %v456_v59 = vld [vmem:[%s941_s3 + $0x78] sm:$0xf0]  ;;  %v471_v61 = vor.u32 %v547_v56, %v470_v55  ;;  %v430_v62 = vld [vmem:[%s941_s3 + $0x40] sm:$0xf]  ;;  %v451_v0 = vor.u32 %v540_v54, %v448_v57 }
  0x83   : > { %v538_v63 = vld [vmem:[%s941_s3 + $0x4c] sm:$0xf0]  ;;  %v459_v1 = vor.u32 %v541_v58, %v456_v59  ;;  %v536_v2 = vld [vmem:[%s941_s3 + $0x44] sm:$0xf]  ;;  %v454_v4 = vld [vmem:[%s941_s3 + $0x68] sm:$0xf] }
  0x84   : > { %v543_v7 = vld [vmem:[%s941_s3 + $0x74] sm:$0xf0]  ;;  %v432_v8 = vld [vmem:[%s941_s3 + $0x50] sm:$0xf0]  ;;  %v537_v9 = vld [vmem:[%s941_s3 + $0x4c] sm:$0xf]  ;;  %v431_v11 = vor.u32 %v538_v63, %v430_v62 }
  0x85   : > { %242 = vmatpush.bf16.msra.mxu0 %v463_v48  ;;  %267 = vmatpush.bf16.msra.mxu2 %v487_v49  ;;  %v440_v10 = vld [vmem:[%s941_s3 + $0x58] sm:$0xf0]  ;;  %v455_v12 = vor.u32 %v543_v7, %v454_v4  ;;  %v414_v13 = vld [vmem:[%s941_s3 + $0x20] sm:$0xf]  ;;  %v534_v14 = vld [vmem:[%s941_s3 + $0x2c] sm:$0xf0]  ;;  %v435_v15 = vor.u32 %v536_v2, %v432_v8 }
  0x86   : > { %255 = vmatpush.bf16.msra.mxu1 %v467_v52  ;;  %281 = vmatpush.bf16.msra.mxu3 %v475_v53  ;;  %v443_v16 = vor.u32 %v537_v9, %v440_v10  ;;  %v532_v17 = vld [vmem:[%s941_s3 + $0x24] sm:$0xf]  ;;  %v438_v18 = vld [vmem:[%s941_s3 + $0x48] sm:$0xf]  ;;  %v539_v19 = vld [vmem:[%s941_s3 + $0x54] sm:$0xf0]  ;;  %v415_v23 = vor.u32 %v534_v14, %v414_v13 }
  0x87   : > { %v416_v20 = vld [vmem:[%s941_s3 + $0x30] sm:$0xf0]  ;;  %v533_v21 = vld [vmem:[%s941_s3 + $0x2c] sm:$0xf]  ;;  %v424_v22 = vld [vmem:[%s941_s3 + $0x38] sm:$0xf0]  ;;  %v439_v24 = vor.u32 %v539_v19, %v438_v18 }
  0x88   : > { %v398_v25 = vld [vmem:[%s941_s3] sm:$0xf]  ;;  %v530_v26 = vld [vmem:[%s941_s3 + $0xc] sm:$0xf0]  ;;  %v419_v27 = vor.u32 %v532_v17, %v416_v20  ;;  %v427_v28 = vor.u32 %v533_v21, %v424_v22  ;;  %v528_v29 = vld [vmem:[%s941_s3 + $0x4] sm:$0xf]  ;;  %v358_v22 = vstv %s638_s2 }
  0x89   : > { %243 = vmatpush.bf16.msra.mxu0 %v447_v60  ;;  %268 = vmatpush.bf16.msra.mxu2 %v471_v61  ;;  %v422_v30 = vld [vmem:[%s941_s3 + $0x28] sm:$0xf]  ;;  %v535_v31 = vld [vmem:[%s941_s3 + $0x34] sm:$0xf0]  ;;  %v400_v32 = vld [vmem:[%s941_s3 + $0x10] sm:$0xf0]  ;;  %v399_v35 = vor.u32 %v530_v26, %v398_v25  ;;  %vm909_vm8 = vcmp.lt.s32.totalorder %v358_v22, %v686_v3 }
  0x8a   : > { %256 = vmatpush.bf16.msra.mxu1 %v451_v0  ;;  %282 = vmatpush.bf16.msra.mxu3 %v459_v1  ;;  %v529_v33 = vld [vmem:[%s941_s3 + $0xc] sm:$0xf]  ;;  %v408_v34 = vld [vmem:[%s941_s3 + $0x18] sm:$0xf0]  ;;  %v423_v36 = vor.u32 %v535_v31, %v422_v30  ;;  %v403_v37 = vor.u32 %v528_v29, %v400_v32  ;;  %v406_v39 = vld [vmem:[%s941_s3 + $0x8] sm:$0xf] }
  0x8b   : > { %v411_v38 = vor.u32 %v529_v33, %v408_v34  ;;  %v531_v40 = vld [vmem:[%s941_s3 + $0x14] sm:$0xf0]  ;;  %s527_s29 = sshll.u32 %s638_s2, 4  ;;  %s32_s2 = sadd.s32 1, %s638_s2  }
  0x8c   : > { %v407_v42 = vor.u32 %v531_v40, %v406_v39  ;;  %s39_s8 = scalar_lea.vmem %s940_s1, %s527_s29  ;;  %p31_p1 = scmp.ge.s32.totalorder %s32_s2, %s939_s0 }
  0x8d   : > { %244 = vmatpush.bf16.msra.mxu0 %v431_v11  ;;  %269 = vmatpush.bf16.msra.mxu2 %v455_v12  ;;  %v40_v43 = vld [vmem:[%s39_s8] sm:$0xff]  ;;  %v41_v49 = vld [vmem:[%s39_s8 + $0x8] sm:$0xff] }
  0x8e   : > { %257 = vmatpush.bf16.msra.mxu1 %v435_v15  ;;  %283 = vmatpush.bf16.msra.mxu3 %v443_v16  ;;  %v42_v44 = vunpack.c.l.bf16 %v40_v43  ;;  %v43_v45 = vunpack.c.h.bf16 %v40_v43  ;;  %v45_v53 = vunpack.c.h.bf16 %v41_v49  ;;  %v44_v0 = vunpack.c.l.bf16 %v41_v49 }
  0x91   : > { %245 = vmatpush.bf16.msra.mxu0 %v415_v23  ;;  %270 = vmatpush.bf16.msra.mxu2 %v439_v24 }
  0x92   : > { %258 = vmatpush.bf16.msra.mxu1 %v419_v27  ;;  %284 = vmatpush.bf16.msra.mxu3 %v427_v28 }
  0x95   : > { %246 = vmatpush.bf16.msra.mxu0 %v399_v35  ;;  %271 = vmatpush.bf16.msra.mxu2 %v423_v36 }
  0x96   : > { %259 = vmatpush.bf16.msra.mxu1 %v403_v37  ;;  %285 = vmatpush.bf16.msra.mxu3 %v411_v38 }
  0x98   : > { %247 = vmatmul.bf16.vlgmr.msra.gmra.mxu0 %v46_v41 }
  0x99   : > { %260 = vmatmul.bf16.vlgmr.msra.gmra.mxu1 %v46_v41  ;;  %286 = vmatmul.bf16.vlgmr.msra.gmra.mxu3 %v46_v41 }
  0x9a   : > { %272 = vmatpush.bf16.msra.mxu2 %v407_v42 }
  0x9d   : > { %273 = vmatmul.bf16.vlgmr.msra.gmra.mxu2 %v46_v41 }
 0x115   : > { %v248_v46 = vpop.f32.mrf.mxu0 }
 0x116   : > { %v291_v47 = vadd.f32 %v248_v46, %v42_v44  ;;  %v261_v48 = vpop.f32.mrf.mxu1 }
 0x117   : > { %v292_v50 = vadd.f32 %v261_v48, %v43_v45 }
 0x118   : > { %v524_v51 = vmul.f32 -1.442695, %v291_v47 }
 0x119   : > { %v525_v52 = vmul.f32 -1.442695, %v292_v50 }
 0x11a   : > { %594 = vpow2.f32 %v524_v51 }
 0x11b   : > { %596 = vpow2.f32 %v525_v52 }
 0x11c   : > { %v287_v54 = vpop.f32.mrf.mxu3 }
 0x11d   : > { %v294_v55 = vadd.f32 %v287_v54, %v45_v53  ;;  %v250_v56 = vpop.f32.mrf.mxu0 }
 0x11e   : > { %v263_v57 = vpop.f32.mrf.mxu1 }
 0x11f   : > { %v526_v58 = vmul.f32 -1.442695, %v294_v55 }
 0x120   : > { %v595_v59 = vpop.eup %594  ;;  %v274_v60 = vpop.f32.mrf.mxu2 }
 0x121   : > { %v597_v61 = vpop.eup %596  ;;  %v298_v62 = vadd.f32 1.0, %v595_v59  ;;  %598 = vpow2.f32 %v526_v58  ;;  %v293_v4 = vadd.f32 %v274_v60, %v44_v0 }
 0x122   : > { %v317_v63 = vadd.f32 1.0, %v597_v61 }
 0x123   : > { %600 = vrcp.f32 %v298_v62  ;;  %v310_v15 = vand.u32 2147483648, %v298_v62  ;;  %v308_v18 = vand.u32 2147483647, %v298_v62  ;;  %vm304_vm2 = vweird.f32 %v298_v62 }
 0x124   : > { %602 = vrcp.f32 %v317_v63  ;;  %v289_v1 = vpop.f32.mrf.mxu3  ;;  %v329_v16 = vand.u32 2147483648, %v317_v63  ;;  %v327_v20 = vand.u32 2147483647, %v317_v63  ;;  %vm323_vm3 = vweird.f32 %v317_v63 }
 0x125   : > { %v311_v26 = vor.u32 1.1754944e-38, %v310_v15  ;;  %vm309_vm6 = vcmp.eq.f32.partialorder %v308_v18, 8.507059e+37 }
 0x126   : > { %v330_v28 = vor.u32 1.1754944e-38, %v329_v16  ;;  %vm328_vm7 = vcmp.eq.f32.partialorder %v327_v20, 8.507059e+37 }
 0x127   : > { %v599_v2 = vpop.eup %598 }
 0x128   : > { %v337_v7 = vadd.f32 1.0, %v599_v2  ;;  %v276_v8 = vpop.f32.mrf.mxu2 }
 0x129   : > { %v601_v9 = vpop.eup %600 }
 0x12a   : > { %v603_v10 = vpop.eup %602  ;;  %v300_v11 = vmul.f32 %v601_v9, %v298_v62  ;;  %604 = vrcp.f32 %v337_v7  ;;  %vm305_vm0 = vweird.f32 %v601_v9  ;;  %v349_v40 = vand.u32 2147483648, %v337_v7 }
 0x12b   : > { %v319_v12 = vmul.f32 %v603_v10, %v317_v63  ;;  %606 = vtanh.f32 %v293_v4  ;;  %vm324_vm1 = vweird.f32 %v603_v10  ;;  %vm306_vm4 = vmor %vm304_vm2, %vm305_vm0  ;;  %vm343_vm10 = vweird.f32 %v337_v7 }
 0x12c   : > { %v301_v13 = vsub.f32 1.0, %v300_v11  ;;  %vm325_vm5 = vmor %vm323_vm3, %vm324_vm1  ;;  %v347_v41 = vand.u32 2147483647, %v337_v7  ;;  %v350_v43 = vor.u32 1.1754944e-38, %v349_v40 }
 0x12d   : > { %v320_v14 = vsub.f32 1.0, %v319_v12 }
 0x12e   : > { %v302_v17 = vmul.f32 %v601_v9, %v301_v13  ;;  %vm348_vm12 = vcmp.eq.f32.partialorder %v347_v41, 8.507059e+37 }
 0x12f   : > { %v321_v19 = vmul.f32 %v603_v10, %v320_v14 }
 0x130   : > { %v605_v21 = vpop.eup %604  ;;  %v303_v23 = vadd.f32 %v601_v9, %v302_v17 }
 0x131   : > { %v607_v24 = vpop.eup %606  ;;  %v339_v25 = vmul.f32 %v605_v21, %v337_v7  ;;  %v322_v27 = vadd.f32 %v603_v10, %v321_v19  ;;  %vm344_vm9 = vweird.f32 %v605_v21 }
 0x132   : > { %v307_v29 = vsel %vm306_vm4, %v601_v9, %v303_v23  ;;  %vm345_vm11 = vmor %vm343_vm10, %vm344_vm9 }
 0x133   : > { %v340_v30 = vsub.f32 1.0, %v339_v25  ;;  %v312_v31 = vsel %vm309_vm6, %v311_v26, %v307_v29  ;;  %v326_v32 = vsel %vm325_vm5, %v603_v10, %v322_v27 }
 0x134   : > { %v331_v33 = vsel %vm328_vm7, %v330_v28, %v326_v32  ;;  %v354_v34 = vmul.f32 %v607_v24, %v312_v31 }
 0x135   : > { %v341_v35 = vmul.f32 %v605_v21, %v340_v30  ;;  %v353_v36 = vmul.f32 %v630_v5, %v331_v33 }
 0x137   : > { %v355_v38 = vadd.f32 %v354_v34, %v353_v36  ;;  %v342_v39 = vadd.f32 %v605_v21, %v341_v35 }
 0x139   : > { %608 = vtanh.f32 %v355_v38  ;;  %v361_v5 = vsel %vm909_vm8, %v355_v38, %v630_v5   ;;  %v346_v42 = vsel %vm345_vm11, %v605_v21, %v342_v39 }
 0x13a   : > { %v351_v45 = vsel %vm348_vm12, %v350_v43, %v346_v42 }
 0x13f   : > { %v609_v44 = vpop.eup %608  ;;  %34 = sbr.rel (!%p31_p1) target bundleno = 118 (0x76), region = 48 }
 0x140   : > { %v357_v46 = vmul.f32 %v609_v44, %v351_v45 }
 0x142   : > { %v360_v47 = vsel %vm909_vm8, %v357_v46, %v634_v6  }
 0x143   : > { %v947_v6 = vmov %v360_v47  ;;  %v948_v4 = vmov (%p31_p1), %v360_v47 }
 0x144 PF:  { %v610_v6 = vld [vmem:[%s942_s4] ss:$0 sm:$0xff]  ;;  %vm374_vm13 = vcmask 7168   ;;  %v642_v4 = vphi %v691_v4, %v948_v4  }
 0x145   :  { %v366_v48 = vmul.f32 %v642_v4, %v610_v6  ;;  %v611_v49 = vld [vmem:[#allocation4] ss:$0 sm:$0xff] }
 0x147   :  { %367 = vadd.xlane.f32.xlu0 %v366_v48 }
 0x1ba   :  { %v368_v50 = vpop.xlane.xlu0 %367 }
 0x1bb   :  { %v373_v51 = vadd.f32 %v611_v49, %v368_v50 }
 0x1bd   :  { %375 = vst.msk [vmem:[%s943_s6] sm:$0xff] %vm374_vm13, %v373_v51 }

</bundles_post_ra>
